<compile_context>
chip_gen: v5e
topology: v5e:2x2
jax: 0.10.0
libtpu: 0.0.40
codegen_flags: <defaults>
</compile_context>

<pallas_src>
import functools

import jax
import jax.numpy as jnp
from jax import lax
from jax.experimental import pallas as pl
from jax.experimental.pallas import tpu as pltpu

_SQRT_HALF = 0.7071067811865476
_BN_EPS = 1e-5


def _gelu_erf(x):
    # PyTorch nn.GELU() default = exact erf formulation.
    return 0.5 * x * (1.0 + lax.erf(x * _SQRT_HALF))


def irb_kernel(
    x_ref,     # (1, 1, Cin, TL + 2)  L-tile of x with a 1-column halo each side
    w1_ref,    # (Ce, Cin)   expand weight  (BN folded)
    b1_ref,    # (Ce, 1)     expand bias    (BN folded)
    wdb_ref,   # (Ce, 4)     [dw tap l-1, dw tap l, dw tap l+1, dw bias] (BN folded)
    w3_ref,    # (Cout, Ce)  project weight (BN folded)
    b3_ref,    # (Cout, 1)   project bias   (BN folded)
    o_ref,     # (1, Cout, TL)
    *, tl: int, seq_len: int, use_residual: bool,
):
    j = pl.program_id(1)                      # L-tile index
    x_ext = x_ref[0, 0]                       # (Cin, TL + 2) f32

    # ---- expand: 1x1 conv (matmul, channels on sublanes / L on lanes) + GELU ----
    h = jnp.dot(w1_ref[...], x_ext, preferred_element_type=jnp.float32)
    h = _gelu_erf(h + b1_ref[...])            # (Ce, TL + 2)

    # Zero halo columns that fall outside [0, L): the depthwise conv's padding=1
    # zero-pads its *input activation* h (not x). One mask multiply per tile.
    col = lax.broadcasted_iota(jnp.int32, (1, tl + 2), 1)
    gcol = j * tl - 1 + col                   # global sequence position per column
    keep = jnp.logical_and(gcol >= 0, gcol < seq_len).astype(jnp.float32)
    h = h * keep                              # (Ce, TL + 2)

    # ---- depthwise conv k=3, pad=1: static lane slices + FMA, then GELU ----
    wdb = wdb_ref[...]
    d = (h[:, 0:tl] * wdb[:, 0:1]
         + h[:, 1:tl + 1] * wdb[:, 1:2]
         + h[:, 2:tl + 2] * wdb[:, 2:3]
         + wdb[:, 3:4])
    d = _gelu_erf(d)                          # (Ce, TL)

    # ---- project: 1x1 conv (matmul) ----
    p = jnp.dot(w3_ref[...], d, preferred_element_type=jnp.float32)
    p = p + b3_ref[...]                       # (Cout, TL)

    if use_residual:
        p = p + x_ext[:, 1:tl + 1]

    o_ref[0] = p.astype(o_ref.dtype)


def _choose_tile(L):
    """Largest 128-multiple tile <= 512 that divides L; else the full length."""
    if L <= 512:
        return L
    for tl in (512, 384, 256, 128):
        if L % tl == 0:
            return tl
    return L


def irb_forward(x_ncl, params, *, tl=None):
    """x_ncl: (N, Cin, L) float32 (PyTorch NCL layout). Returns (N, Cout, L)."""
    N, Cin, L = x_ncl.shape
    Ce = params["w1"].shape[0]
    Cout = params["w3"].shape[0]
    use_residual = Cin == Cout

    if tl is None:
        tl = _choose_tile(L)
    assert L % tl == 0, f"sequence length {L} not divisible by tile {tl}"
    nt = L // tl

    x = x_ncl.astype(jnp.float32)
    # Extended (haloed) L-tiles: xe[n, j] = zero-padded x[n, :, j*tl-1 : (j+1)*tl+1].
    xp = jnp.pad(x, ((0, 0), (0, 0), (1, 1)))
    xe = jnp.stack([xp[:, :, j * tl: j * tl + tl + 2] for j in range(nt)], axis=1)
    # xe: (N, nt, Cin, tl + 2)

    kernel = functools.partial(irb_kernel, tl=tl, seq_len=L,
                               use_residual=use_residual)
    const = lambda shape: pl.BlockSpec(shape, lambda n, j: (0, 0))

    return pl.pallas_call(
        kernel,
        out_shape=jax.ShapeDtypeStruct((N, Cout, L), jnp.float32),
        grid_spec=pltpu.PrefetchScalarGridSpec(
            num_scalar_prefetch=0,
            grid=(N, nt),
            in_specs=[
                pl.BlockSpec((1, 1, Cin, tl + 2), lambda n, j: (n, j, 0, 0)),
                const((Ce, Cin)), const((Ce, 1)),
                const((Ce, 4)),
                const((Cout, Ce)), const((Cout, 1)),
            ],
            out_specs=pl.BlockSpec((1, Cout, tl), lambda n, j: (n, 0, j)),
        ),
        compiler_params=pltpu.CompilerParams(
            # No cross-step carries -> both axes parallel (v7x: 2 TensorCores).
            dimension_semantics=("parallel", "parallel"),
            # Explicit budget: above v5e's 16 MiB scoped default, well under
            # v7x's 64 MiB physical VMEM; the TL<=512 tiles are far below it.
            vmem_limit_bytes=32 * 1024 * 1024,
        ),
    )(xe, params["w1"], params["b1"], params["wdb"], params["w3"], params["b3"])


def make_params(key, in_channels, out_channels, expansion_factor=4):
    """Deterministic synthetic parameters in PyTorch layout (eval-mode BN stats)."""
    Cin, Cout = in_channels, out_channels
    Ce = Cin * expansion_factor
    ks = jax.random.split(key, 18)

    def bn_stats(kg, kb, km, kv, C):
        gamma = 1.0 + 0.1 * jax.random.normal(kg, (C,), jnp.float32)
        beta = 0.1 * jax.random.normal(kb, (C,), jnp.float32)
        mean = 0.1 * jax.random.normal(km, (C,), jnp.float32)
        var = jnp.abs(1.0 + 0.1 * jax.random.normal(kv, (C,), jnp.float32))
        return gamma, beta, mean, var

    return {
        # expand 1x1 conv: (Ce, Cin)  [PyTorch Conv1d weight (Ce, Cin, 1) squeezed]
        "w1": 0.3 * jax.random.normal(ks[0], (Ce, Cin), jnp.float32),
        "b1": 0.05 * jax.random.normal(ks[1], (Ce,), jnp.float32),
        "bn1": bn_stats(ks[2], ks[3], ks[4], ks[5], Ce),
        # depthwise k=3 conv: (Ce, 3), tap k applied to h[l - 1 + k]
        "wd": 0.3 * jax.random.normal(ks[6], (Ce, 3), jnp.float32),
        "bd": 0.05 * jax.random.normal(ks[7], (Ce,), jnp.float32),
        "bn2": bn_stats(ks[8], ks[9], ks[10], ks[11], Ce),
        # project 1x1 conv: (Cout, Ce)
        "w3": 0.3 * jax.random.normal(ks[12], (Cout, Ce), jnp.float32),
        "b3": 0.05 * jax.random.normal(ks[13], (Cout,), jnp.float32),
        "bn3": bn_stats(ks[14], ks[15], ks[16], ks[17], Cout),
    }


def fold_params(raw):
    """Fold eval-mode BatchNorm (and conv bias) into each conv's weight/bias."""
    def fold(gamma, beta, mean, var):
        s = gamma / jnp.sqrt(var + _BN_EPS)
        return s, beta - mean * s

    s1, t1 = fold(*raw["bn1"])
    s2, t2 = fold(*raw["bn2"])
    s3, t3 = fold(*raw["bn3"])

    wd = raw["wd"] * s2[:, None]                       # (Ce, 3)
    bd = (raw["bd"] * s2 + t2)[:, None]                # (Ce, 1)
    return {
        "w1": raw["w1"] * s1[:, None],                 # (Ce, Cin)
        "b1": (raw["b1"] * s1 + t1)[:, None],          # (Ce, 1)
        "wdb": jnp.concatenate([wd, bd], axis=1),      # (Ce, 4)
        "w3": raw["w3"] * s3[:, None],                 # (Cout, Ce)
        "b3": (raw["b3"] * s3 + t3)[:, None],          # (Cout, 1)
    }


def irb_reference(x_ncl, raw):
    """Pure-JAX reference of the original (unfused) eval-mode forward pass."""
    x = x_ncl.astype(jnp.float32)                      # (N, Cin, L)
    Cin = x.shape[1]
    Cout = raw["w3"].shape[0]

    def bn(v, stats):
        gamma, beta, mean, var = stats
        inv = gamma / jnp.sqrt(var + _BN_EPS)
        return (v - mean[None, :, None]) * inv[None, :, None] + beta[None, :, None]

    h = jnp.einsum("ec,ncl->nel", raw["w1"], x) + raw["b1"][None, :, None]
    h = _gelu_erf(bn(h, raw["bn1"]))

    hp = jnp.pad(h, ((0, 0), (0, 0), (1, 1)))
    d = (hp[:, :, :-2] * raw["wd"][None, :, 0:1]
         + hp[:, :, 1:-1] * raw["wd"][None, :, 1:2]
         + hp[:, :, 2:] * raw["wd"][None, :, 2:3]
         + raw["bd"][None, :, None])
    d = _gelu_erf(bn(d, raw["bn2"]))

    p = jnp.einsum("oe,nel->nol", raw["w3"], d) + raw["b3"][None, :, None]
    p = bn(p, raw["bn3"])
    if Cin == Cout:
        p = p + x
    return p


if __name__ == "__main__":
    in_channels = 8
    out_channels = 8
    expansion_factor = 4
    N, L = 2, 16

    key = jax.random.PRNGKey(0)
    kx, kp = jax.random.split(key)
    x = jax.random.normal(kx, (N, in_channels, L), jnp.float32)   # PyTorch NCL
    raw = make_params(kp, in_channels, out_channels, expansion_factor)
    folded = fold_params(raw)

    out = jax.block_until_ready(irb_forward(x, folded))
    ref = irb_reference(x, raw)
    assert out.shape == (N, out_channels, L)
    # Tolerance covers MXU-f32 vs XLA default-precision matmul differences.
    assert jnp.allclose(out, ref, atol=2e-2, rtol=1e-2), "mismatch vs JAX reference"

    # Multi-tile check: L = 384 -> TL = 128, three L-tiles per sequence, which
    # exercises the depthwise halo handling at interior tile boundaries.
    x2 = jax.random.normal(jax.random.fold_in(key, 7),
                           (N, in_channels, 384), jnp.float32)
    out2 = jax.block_until_ready(irb_forward(x2, folded))
    ref2 = irb_reference(x2, raw)
    assert out2.shape == (N, out_channels, 384)
    assert jnp.allclose(out2, ref2, atol=2e-2, rtol=1e-2), "mismatch (tiled) vs JAX reference"

    print("KERNEL_OK")
</pallas_src>

<mosaic_0001>
module attributes {stable_mosaic.version = 11 : i64} {
  func.func @irb_kernel(%arg0: i32, %arg1: i32, %arg2: memref<1x1x8x18xf32, #tpu.memory_space<vmem>>, %arg3: memref<32x8xf32, #tpu.memory_space<vmem>>, %arg4: memref<32x1xf32, #tpu.memory_space<vmem>>, %arg5: memref<32x4xf32, #tpu.memory_space<vmem>>, %arg6: memref<8x32xf32, #tpu.memory_space<vmem>>, %arg7: memref<8x1xf32, #tpu.memory_space<vmem>>, %arg8: memref<1x8x16xf32, #tpu.memory_space<vmem>>) attributes {dimension_semantics = [#tpu.dimension_semantics<parallel>, #tpu.dimension_semantics<parallel>], iteration_bounds = array<i64: 2, 1>, scalar_prefetch = 0 : i64, scratch_operands = 0 : i64, tpu.core_type = #tpu.core_type<tc>, window_params = [{transform_indices = @transform_0, window_bounds = array<i64: 1, 1, 8, 18>}, {pipeline_mode = #tpu.pipeline_mode<synchronous>, transform_indices = @transform_1, window_bounds = array<i64: 32, 8>}, {pipeline_mode = #tpu.pipeline_mode<synchronous>, transform_indices = @transform_2, window_bounds = array<i64: 32, 1>}, {pipeline_mode = #tpu.pipeline_mode<synchronous>, transform_indices = @transform_3, window_bounds = array<i64: 32, 4>}, {pipeline_mode = #tpu.pipeline_mode<synchronous>, transform_indices = @transform_4, window_bounds = array<i64: 8, 32>}, {pipeline_mode = #tpu.pipeline_mode<synchronous>, transform_indices = @transform_5, window_bounds = array<i64: 8, 1>}, {transform_indices = @transform_6, window_bounds = array<i64: 1, 8, 16>}]} {
    %c0 = arith.constant 0 : index
    %c0_0 = arith.constant 0 : index
    %c0_1 = arith.constant 0 : index
    %c0_2 = arith.constant 0 : index
    %0 = vector.load %arg2[%c0, %c0_0, %c0_1, %c0_2] : memref<1x1x8x18xf32, #tpu.memory_space<vmem>>, vector<1x1x8x18xf32>
    %1 = vector.shape_cast %0 : vector<1x1x8x18xf32> to vector<8x18xf32>
    %c0_3 = arith.constant 0 : index
    %c0_4 = arith.constant 0 : index
    %2 = vector.load %arg3[%c0_3, %c0_4] : memref<32x8xf32, #tpu.memory_space<vmem>>, vector<32x8xf32>
    %cst = arith.constant dense<0.000000e+00> : vector<32x18xf32>
    %3 = tpu.matmul %2, %1, %cst {dimension_numbers = #tpu.dot_dimension_numbers<[1], [0], [0], [1], [0, 0, 1, 1], [], []>} : vector<32x8xf32>, vector<8x18xf32>, vector<32x18xf32> -> vector<32x18xf32>
    %c0_5 = arith.constant 0 : index
    %c0_6 = arith.constant 0 : index
    %4 = vector.load %arg4[%c0_5, %c0_6] : memref<32x1xf32, #tpu.memory_space<vmem>>, vector<32x1xf32>
    %5 = vector.broadcast %4 : vector<32x1xf32> to vector<32x18xf32>
    %6 = arith.addf %3, %5 : vector<32x18xf32>
    %cst_7 = arith.constant 5.000000e-01 : f32
    %7 = vector.broadcast %cst_7 : f32 to vector<32x18xf32>
    %8 = arith.mulf %7, %6 : vector<32x18xf32>
    %cst_8 = arith.constant 0.707106769 : f32
    %9 = vector.broadcast %cst_8 : f32 to vector<32x18xf32>
    %10 = arith.mulf %6, %9 : vector<32x18xf32>
    %11 = math.erf %10 : vector<32x18xf32>
    %cst_9 = arith.constant 1.000000e+00 : f32
    %12 = vector.broadcast %cst_9 : f32 to vector<32x18xf32>
    %13 = arith.addf %12, %11 : vector<32x18xf32>
    %14 = arith.mulf %8, %13 : vector<32x18xf32>
    %15 = tpu.iota {dimensions = array<i32: 1>} : vector<1x18xi32>
    %c16_i32 = arith.constant 16 : i32
    %16 = arith.muli %arg1, %c16_i32 : i32
    %c1_i32 = arith.constant 1 : i32
    %17 = arith.subi %16, %c1_i32 : i32
    %18 = vector.broadcast %17 : i32 to vector<1x18xi32>
    %19 = arith.addi %18, %15 : vector<1x18xi32>
    %c0_i32 = arith.constant 0 : i32
    %20 = vector.broadcast %c0_i32 : i32 to vector<1x18xi32>
    %21 = arith.cmpi sge, %19, %20 : vector<1x18xi32>
    %c16_i32_10 = arith.constant 16 : i32
    %22 = vector.broadcast %c16_i32_10 : i32 to vector<1x18xi32>
    %23 = arith.cmpi slt, %19, %22 : vector<1x18xi32>
    %24 = arith.andi %21, %23 : vector<1x18xi1>
    %25 = arith.extui %24 : vector<1x18xi1> to vector<1x18xi32>
    %26 = arith.sitofp %25 : vector<1x18xi32> to vector<1x18xf32>
    %27 = vector.broadcast %26 : vector<1x18xf32> to vector<32x18xf32>
    %28 = arith.mulf %14, %27 : vector<32x18xf32>
    %c0_11 = arith.constant 0 : index
    %c0_12 = arith.constant 0 : index
    %29 = vector.load %arg5[%c0_11, %c0_12] : memref<32x4xf32, #tpu.memory_space<vmem>>, vector<32x4xf32>
    %30 = vector.extract_strided_slice %28 {offsets = [0, 0], sizes = [32, 16], strides = [1, 1]} : vector<32x18xf32> to vector<32x16xf32>
    %31 = vector.extract_strided_slice %29 {offsets = [0, 0], sizes = [32, 1], strides = [1, 1]} : vector<32x4xf32> to vector<32x1xf32>
    %32 = vector.broadcast %31 : vector<32x1xf32> to vector<32x16xf32>
    %33 = arith.mulf %30, %32 : vector<32x16xf32>
    %34 = vector.extract_strided_slice %28 {offsets = [0, 1], sizes = [32, 16], strides = [1, 1]} : vector<32x18xf32> to vector<32x16xf32>
    %35 = vector.extract_strided_slice %29 {offsets = [0, 1], sizes = [32, 1], strides = [1, 1]} : vector<32x4xf32> to vector<32x1xf32>
    %36 = vector.broadcast %35 : vector<32x1xf32> to vector<32x16xf32>
    %37 = arith.mulf %34, %36 : vector<32x16xf32>
    %38 = arith.addf %33, %37 : vector<32x16xf32>
    %39 = vector.extract_strided_slice %28 {offsets = [0, 2], sizes = [32, 16], strides = [1, 1]} : vector<32x18xf32> to vector<32x16xf32>
    %40 = vector.extract_strided_slice %29 {offsets = [0, 2], sizes = [32, 1], strides = [1, 1]} : vector<32x4xf32> to vector<32x1xf32>
    %41 = vector.broadcast %40 : vector<32x1xf32> to vector<32x16xf32>
    %42 = arith.mulf %39, %41 : vector<32x16xf32>
    %43 = arith.addf %38, %42 : vector<32x16xf32>
    %44 = vector.extract_strided_slice %29 {offsets = [0, 3], sizes = [32, 1], strides = [1, 1]} : vector<32x4xf32> to vector<32x1xf32>
    %45 = vector.broadcast %44 : vector<32x1xf32> to vector<32x16xf32>
    %46 = arith.addf %43, %45 : vector<32x16xf32>
    %cst_13 = arith.constant 5.000000e-01 : f32
    %47 = vector.broadcast %cst_13 : f32 to vector<32x16xf32>
    %48 = arith.mulf %47, %46 : vector<32x16xf32>
    %cst_14 = arith.constant 0.707106769 : f32
    %49 = vector.broadcast %cst_14 : f32 to vector<32x16xf32>
    %50 = arith.mulf %46, %49 : vector<32x16xf32>
    %51 = math.erf %50 : vector<32x16xf32>
    %cst_15 = arith.constant 1.000000e+00 : f32
    %52 = vector.broadcast %cst_15 : f32 to vector<32x16xf32>
    %53 = arith.addf %52, %51 : vector<32x16xf32>
    %54 = arith.mulf %48, %53 : vector<32x16xf32>
    %c0_16 = arith.constant 0 : index
    %c0_17 = arith.constant 0 : index
    %55 = vector.load %arg6[%c0_16, %c0_17] : memref<8x32xf32, #tpu.memory_space<vmem>>, vector<8x32xf32>
    %cst_18 = arith.constant dense<0.000000e+00> : vector<8x16xf32>
    %56 = tpu.matmul %55, %54, %cst_18 {dimension_numbers = #tpu.dot_dimension_numbers<[1], [0], [0], [1], [0, 0, 1, 1], [], []>} : vector<8x32xf32>, vector<32x16xf32>, vector<8x16xf32> -> vector<8x16xf32>
    %c0_19 = arith.constant 0 : index
    %c0_20 = arith.constant 0 : index
    %57 = vector.load %arg7[%c0_19, %c0_20] : memref<8x1xf32, #tpu.memory_space<vmem>>, vector<8x1xf32>
    %58 = vector.broadcast %57 : vector<8x1xf32> to vector<8x16xf32>
    %59 = arith.addf %56, %58 : vector<8x16xf32>
    %60 = vector.extract_strided_slice %1 {offsets = [0, 1], sizes = [8, 16], strides = [1, 1]} : vector<8x18xf32> to vector<8x16xf32>
    %61 = arith.addf %59, %60 : vector<8x16xf32>
    %c0_21 = arith.constant 0 : index
    %c0_22 = arith.constant 0 : index
    %c0_23 = arith.constant 0 : index
    %62 = vector.load %arg8[%c0_21, %c0_22, %c0_23] : memref<1x8x16xf32, #tpu.memory_space<vmem>>, vector<1x8x16xf32>
    %63 = vector.shape_cast %62 : vector<1x8x16xf32> to vector<8x16xf32>
    %64 = vector.shape_cast %61 : vector<8x16xf32> to vector<1x8x16xf32>
    tpu.vector_store %arg8[%c0_21, %c0_22, %c0_23], %64 {strides = array<i32>} : memref<1x8x16xf32, #tpu.memory_space<vmem>>, vector<1x8x16xf32>,
    return
  }
  func.func @transform_0(%arg0: i32, %arg1: i32) -> (i32, i32, i32, i32) {
    %c0_i32 = arith.constant 0 : i32
    %c0_i32_0 = arith.constant 0 : i32
    %c0_i32_1 = arith.constant 0 : i32
    return %arg0, %arg1, %c0_i32, %c0_i32_0 : i32, i32, i32, i32
  }
  func.func @transform_1(%arg0: i32, %arg1: i32) -> (i32, i32) {
    %c0_i32 = arith.constant 0 : i32
    %c0_i32_0 = arith.constant 0 : i32
    %c0_i32_1 = arith.constant 0 : i32
    return %c0_i32, %c0_i32_0 : i32, i32
  }
  func.func @transform_2(%arg0: i32, %arg1: i32) -> (i32, i32) {
    %c0_i32 = arith.constant 0 : i32
    %c0_i32_0 = arith.constant 0 : i32
    %c0_i32_1 = arith.constant 0 : i32
    return %c0_i32, %c0_i32_0 : i32, i32
  }
  func.func @transform_3(%arg0: i32, %arg1: i32) -> (i32, i32) {
    %c0_i32 = arith.constant 0 : i32
    %c0_i32_0 = arith.constant 0 : i32
    %c0_i32_1 = arith.constant 0 : i32
    return %c0_i32, %c0_i32_0 : i32, i32
  }
  func.func @transform_4(%arg0: i32, %arg1: i32) -> (i32, i32) {
    %c0_i32 = arith.constant 0 : i32
    %c0_i32_0 = arith.constant 0 : i32
    %c0_i32_1 = arith.constant 0 : i32
    return %c0_i32, %c0_i32_0 : i32, i32
  }
  func.func @transform_5(%arg0: i32, %arg1: i32) -> (i32, i32) {
    %c0_i32 = arith.constant 0 : i32
    %c0_i32_0 = arith.constant 0 : i32
    %c0_i32_1 = arith.constant 0 : i32
    return %c0_i32, %c0_i32_0 : i32, i32
  }
  func.func @transform_6(%arg0: i32, %arg1: i32) -> (i32, i32, i32) {
    %c0_i32 = arith.constant 0 : i32
    %c0_i32_0 = arith.constant 0 : i32
    return %arg0, %c0_i32, %arg1 : i32, i32, i32
  }
}

</mosaic_0001>

<bundles_post_ra>
// kernel: tpu_custom_call.1
= control target key start
LH: loop header
LB: loop body
LE: loop exit
PB: predicated region body
PF: predicated region fallthrough
CT: control target
= control target key end

     0   :  { %11 = vsyncpa [#allocation3], 0  ;;  %s1617_s0 = inlined_call_operand.vmem [shape: f32[2,1,8,18], index: 0, kind: input, shape index: {}]   ;;  %s1618_s1 = inlined_call_operand.vmem [shape: f32[32,8], index: 1, kind: input, shape index: {}]   ;;  %s1619_s2 = inlined_call_operand.vmem [shape: f32[32,1], index: 2, kind: input, shape index: {}]   ;;  %s1620_s3 = inlined_call_operand.vmem [shape: f32[32,4], index: 3, kind: input, shape index: {}]   ;;  %s1621_s4 = inlined_call_operand.vmem [shape: f32[8,32], index: 4, kind: input, shape index: {}]   ;;  %s1622_s5 = inlined_call_operand.vmem [shape: f32[8,1], index: 5, kind: input, shape index: {}]   ;;  %s1623_s6 = inlined_call_operand.hbm [shape: f32[2,8,16], index: 6, kind: output, shape index: {}]  }
   0x1   :  { %13 = vsyncpa [#allocation3 + $0x1], 0  ;;  %s1202_s21 = smov 0   ;;  %s1204_s22 = smov 0  }
   0x2   :  { %s1206_s23 = smov 0   ;;  %s1208_s24 = smov 0  }
   0x3   :  { %s1210_s25 = smov 0   ;;  %s1212_s26 = smov 0  }
   0x4 LB: > { %s964_s27 = sadd.s32 4294967295, %s1158_s26   ;;  %s965_s28 = sadd.s32 4294967294, %s1158_s26   ;;  %s1158_s26 = sphi %s1212_s26, %s19_s26   ;;  %s1154_s25 = sphi %s1210_s25, %s1636_s25   ;;  %s1150_s24 = sphi %s1208_s24, %s1635_s24   ;;  %s1146_s23 = sphi %s1206_s23, %s1634_s23   ;;  %s1142_s22 = sphi %s1204_s22, %s1633_s22   ;;  %s1138_s21 = sphi %s1202_s21, %s1632_s21  }
   0x5   : > { %s31_s29 = sadd.s32 1, %s1154_s25  ;;  %s173_s30 = sadd.s32 1, %s1146_s23 }
   0x6   : > { %p33_p0 = scmp.ge.s32.totalorder %s31_s29, 2  ;;  %p183_p1 = scmp.ne.s32.totalorder %s1146_s23, %s1142_s22 }
   0x7   : > { %p184_p2 = scmp.eq.s32.totalorder %s964_s27, 1  ;;  %p189_p3 = scmp.ne.s32.totalorder %s1142_s22, %s1138_s21 }
   0x8   : > { %s1638_s29 = smov (%p33_p0, %s31_s29), 0  ;;  %p190_p5 = scmp.eq.s32.totalorder %s965_s28, 1 }
   0x9   : > { %p1242_p4 = por %p184_p2, %p183_p1  ;;  %s168_s8 = ssub.s32 %s1154_s25, %s1638_s29 }
   0xa   : > { %p968_p6 = scmp.ge.s32.totalorder %s1158_s26, 1  ;;  %p171_p7 = scmp.eq.s32.totalorder %s168_s8, 0 }
   0xb   : > { %p1249_p8 = por %p190_p5, %p189_p3  ;;  %p233_p9 = scmp.lt.s32.totalorder %s1158_s26, 3 }
   0xc   : > { %s1255_s10 = scalar_select %p171_p7, %s1146_s23, %s173_s30  }
   0xd   : > { %p234_p10 = pnand %p968_p6, %p233_p9 }
   0xe   : > { %p265_p11 = scmp.lt.s32.totalorder (!%p234_p10), %s1150_s24, 1  ;;  %s1164_s12 = smov (!%p234_p10), 127  }
   0xf   : > { %237 = sbr.rel (%p234_p10) target bundleno = 553 (0x229), region = 44  ;;  %s1166_s13 = smov (!%p234_p10), 126  }
  0x10   : > { %s986_s20 = sshll.u32 (!%p234_p10), %s1150_s24, 3  ;;  %s1100_s17 = scalar_lea.hbm (!%p234_p10), %s1623_s6, 16 }
  0x11   : > { %s888_s30 = scalar_lea.hbm (!%p234_p10), %s1623_s6, %s986_s20 }
  0x14   : > { %v1160_v0 = vmov 0   ;;  %v278_v1 = vld [vmem:[%s1619_s2 + $0x8] sm:$0xff]  ;;  %v280_v2 = vld [vmem:[%s1619_s2 + $0x18] sm:$0xff]  ;;  %s266_s15 = scalar_select %p265_p11, %s1150_s24, 1  ;;  %v1161_v4 = vmov 1   ;;  %v273_v5 = vld [vmem:[%s1618_s1] sm:$0xff] }
  0x15   : > { %1054 = vset.pattern.permute.xlu1 %v1160_v0  ;;  %1053 = vset.pattern.permute.xlu0 %v1160_v0  ;;  %v1270_v3 = vld [vmem:[%s1620_s3 + $0x18] sm:$0xff]  ;;  %vm301_vm0 = vcmask 64512   ;;  %v274_v7 = vld [vmem:[%s1618_s1 + $0x8] sm:$0xff]  ;;  %v277_v9 = vld [vmem:[%s1619_s2] sm:$0xff]  ;;  %v1162_v13 = vmov 2  }
  0x16   : > { %288 = vperm.xlu1 %1054, %v278_v1   ;;  %298 = vperm.xlu0 %1053, %v280_v2   ;;  %s970_s18 = sshll.u32 %s266_s15, 3  ;;  %v276_v8 = vld [vmem:[%s1618_s1 + $0x18] sm:$0xff]  ;;  %v279_v10 = vld [vmem:[%s1619_s2 + $0x10] sm:$0xff]  ;;  %v1305_v12 = vld [vmem:[%s1620_s3 + $0x8] sm:$0xff] }
  0x17   : > { %1055 = vset.pattern.permute.xlu2 %v1161_v4  ;;  %s271_s27 = scalar_lea.vmem %s1617_s0, %s970_s18  ;;  %v275_v11 = vld [vmem:[%s1618_s1 + $0x10] sm:$0xff]  ;;  %v1319_v15 = vld [vmem:[%s1620_s3] sm:$0xff]  ;;  %s262_s18 = sand.u32 1, %s1142_s22  }
  0x18   : > { %575 = vperm.xlu2 %1055, %v1270_v3   ;;  %v1279_v6 = vld [vmem:[%s271_s27] sm:$0xff]  ;;  %v1313_v14 = vld [vmem:[%s1620_s3 + $0x10] sm:$0xff]  ;;  %s969_s19 = sshll.u32 %s262_s18, 3 }
  0x19   : > { %329 = vmatpush.msra.mxu0 %v1279_v6  ;;  %989 = vmatpush.msra.mxu2 %v1279_v6  ;;  %s264_s8 = scalar_lea.vmem [#allocation2], %s969_s19 }
  0x1a   : > { %990 = vmatpush.msra.mxu3 %v1279_v6  ;;  %971 = vmatmul.msk.f32.vlgmr.msra.gmra.mxu0 %vm301_vm0, %v273_v5  ;;  %s890_s11 = sshll.u32 %s264_s8, 4  ;;  %s891_s11 = int_to_ptr.vmem [resolvable:$true] %s890_s11 }
  0x1b   : > { %972 = vmatmul.msk.f32.vlgmr.msra.gmra.mxu2 %vm301_vm0, %v274_v7  ;;  %974 = vmatmul.msk.f32.vlgmr.msra.gmra.mxu3 %vm301_vm0, %v276_v8 }
  0x1e   : > { %283 = vperm.xlu1 %1054, %v277_v9   ;;  %293 = vperm.xlu0 %1053, %v279_v10  }
  0x20   : > { %571 = vperm.xlu2 %1055, %v1313_v14  }
  0x23   : > { %973 = vmatmul.msk.f32.gmra.mxu2 %vm301_vm0, %v275_v11 }
  0x26   : > { %1057 = vset.pattern.permute.xlu1 %v1161_v4  ;;  %1056 = vset.pattern.permute.xlu0 %v1162_v13 }
  0x27   : > { %567 = vperm.xlu1 %1057, %v1305_v12   ;;  %615 = vperm.xlu0 %1056, %v1270_v3  }
  0x28   : > { %1058 = vset.pattern.permute.xlu2 %v1162_v13 }
  0x29   : > { %611 = vperm.xlu2 %1058, %v1313_v14  }
  0x2f   : > { %563 = vperm.xlu1 %1057, %v1319_v15   ;;  %603 = vperm.xlu0 %1056, %v1319_v15  }
  0x31   : > { %607 = vperm.xlu2 %1058, %v1305_v12  }
  0x37   : > { %1059 = vset.pattern.permute.xlu1 %v1160_v0 }
  0x38   : > { %555 = vperm.xlu1 %1059, %v1270_v3  }
  0x39   : > { %1060 = vset.pattern.permute.xlu2 %v1160_v0 }
  0x3a   : > { %550 = vperm.xlu2 %1060, %v1313_v14  }
  0x40   : > { %545 = vperm.xlu1 %1059, %v1305_v12  }
  0x48   : > { %540 = vperm.xlu1 %1059, %v1319_v15  }
  0x88   : > { %v289_v16 = vpop.permute.xlu1 %288  ;;  %v299_v22 = vpop.permute.xlu0 %298 }
  0x90   : > { %v284_v17 = vpop.permute.xlu1 %283  ;;  %v294_v43 = vpop.permute.xlu0 %293 }
  0x97   : > { %v331_v18 = vpop.f32.mrf.mxu0 }
  0x98   : > { %v1331_v19 = vadd.f32 %v331_v18, %v284_v17  ;;  %v1163_v17 = vmov 3  }
  0x99   : > { %1061 = vset.pattern.permute.xlu1 %v1163_v17  ;;  %1062 = vset.pattern.permute.xlu0 %v1163_v17 }
  0x9a   : > { %v1334_v20 = vmul.f32 0.70710677, %v1331_v19  ;;  %655 = vperm.xlu1 %1061, %v1270_v3  }
  0x9c   : > { %v351_v21 = vmul.f32 %v1334_v20, %v1334_v20 }
  0x9e   : > { %v1338_v23 = vmin.f32 %v351_v21, 16.0  ;;  %v334_v24 = vpop.f32.mrf.mxu2  ;;  %v340_v25 = vpop.f32.mrf.mxu3 }
  0x9f   : > { %v1340_v26 = vadd.f32 %v334_v24, %v289_v16  ;;  %v1342_v27 = vadd.f32 %v340_v25, %v299_v22 }
  0xa0   : > { %v353_v28 = vmul.f32 2.1237322e-06, %v1338_v23  ;;  %v364_v29 = vmul.f32 3.8918573e-05, %v1338_v23 }
  0xa1   : > { %v1347_v30 = vmul.f32 0.70710677, %v1340_v26  ;;  %v1350_v31 = vmul.f32 0.70710677, %v1342_v27 }
  0xa2   : > { %v354_v32 = vadd.f32 0.00028619796, %v353_v28  ;;  %v365_v33 = vadd.f32 0.001143296, %v364_v29  ;;  %651 = vperm.xlu1 %1061, %v1313_v14  }
  0xa3   : > { %v391_v34 = vmul.f32 %v1347_v30, %v1347_v30  ;;  %v471_v35 = vmul.f32 %v1350_v31, %v1350_v31 }
  0xa4   : > { %v355_v36 = vmul.f32 %v354_v32, %v1338_v23  ;;  %v366_v37 = vmul.f32 %v365_v33, %v1338_v23 }
  0xa5   : > { %v1358_v38 = vmin.f32 %v391_v34, 16.0  ;;  %v1360_v39 = vmin.f32 %v471_v35, 16.0 }
  0xa6   : > { %v356_v40 = vadd.f32 0.0036580483, %v355_v36  ;;  %v367_v41 = vadd.f32 0.014752088, %v366_v37  ;;  %v337_v42 = vpop.f32.mrf.mxu2 }
  0xa7   : > { %v393_v44 = vmul.f32 2.1237322e-06, %v1358_v38  ;;  %v404_v45 = vmul.f32 3.8918573e-05, %v1358_v38  ;;  %v473_v46 = vmul.f32 2.1237322e-06, %v1360_v39  ;;  %v1368_v50 = vadd.f32 %v337_v42, %v294_v43 }
  0xa8   : > { %v357_v47 = vmul.f32 %v356_v40, %v1338_v23  ;;  %v368_v48 = vmul.f32 %v367_v41, %v1338_v23  ;;  %v484_v49 = vmul.f32 3.8918573e-05, %v1360_v39  ;;  %v519_v43 = vlaneseq }
  0xa9   : > { %v394_v51 = vadd.f32 0.00028619796, %v393_v44  ;;  %v405_v52 = vadd.f32 0.001143296, %v404_v45  ;;  %v474_v53 = vadd.f32 0.00028619796, %v473_v46 }
  0xaa   : > { %v369_v54 = vadd.f32 0.112945676, %v368_v48  ;;  %v485_v55 = vadd.f32 0.001143296, %v484_v49  ;;  %v358_v56 = vadd.f32 0.05243302, %v357_v47  ;;  %643 = vperm.xlu1 %1061, %v1319_v15  }
  0xab   : > { %v395_v57 = vmul.f32 %v394_v51, %v1358_v38  ;;  %v406_v58 = vmul.f32 %v405_v52, %v1358_v38  ;;  %v475_v59 = vmul.f32 %v474_v53, %v1360_v39  ;;  %v1376_v62 = vmul.f32 0.70710677, %v1368_v50 }
  0xac   : > { %v370_v60 = vmul.f32 %v369_v54, %v1338_v23  ;;  %v486_v61 = vmul.f32 %v485_v55, %v1360_v39  ;;  %v359_v8 = vmul.f32 %v358_v56, %v1338_v23  ;;  %v520_v54 = vand.u32 127, %v519_v43 }
  0xad   : > { %v396_v63 = vadd.f32 0.0036580483, %v395_v57  ;;  %v407_v1 = vadd.f32 0.014752088, %v406_v58  ;;  %v476_v2 = vadd.f32 0.0036580483, %v475_v59  ;;  %v431_v7 = vmul.f32 %v1376_v62, %v1376_v62 }
  0xae   : > { %v371_v4 = vadd.f32 0.4994258, %v370_v60  ;;  %v487_v5 = vadd.f32 0.014752088, %v486_v61  ;;  %v360_v28 = vadd.f32 0.18741608, %v359_v8 }
  0xaf   : > { %v397_v9 = vmul.f32 %v396_v63, %v1358_v38  ;;  %v408_v10 = vmul.f32 %v407_v1, %v1358_v38  ;;  %v477_v13 = vmul.f32 %v476_v2, %v1360_v39  ;;  %v1386_v21 = vmin.f32 %v431_v7, 16.0 }
  0xb0   : > { %v372_v11 = vmul.f32 %v371_v4, %v1338_v23  ;;  %v488_v16 = vmul.f32 %v487_v5, %v1360_v39  ;;  %v361_v37 = vmul.f32 %v360_v28, %v1338_v23  ;;  %v343_v61 = vmul.f32 0.5, %v1331_v19 }
  0xb1   : > { %v409_v18 = vadd.f32 0.112945676, %v408_v10  ;;  %v398_v24 = vadd.f32 0.05243302, %v397_v9  ;;  %v478_v32 = vadd.f32 0.05243302, %v477_v13 }
  0xb2   : > { %v373_v22 = vadd.f32 1.0, %v372_v11  ;;  %v489_v25 = vadd.f32 0.112945676, %v488_v16  ;;  %v433_v35 = vmul.f32 2.1237322e-06, %v1386_v21  ;;  %v524_v2 = vadd.s32 4294967295, %v520_v54  ;;  %870 = vrot.lane.b32.xlu1 %v1279_v6, %s1164_s12 }
  0xb3   : > { %v410_v29 = vmul.f32 %v409_v18, %v1358_v38  ;;  %v399_v36 = vmul.f32 %v398_v24, %v1358_v38  ;;  %v479_v41 = vmul.f32 %v478_v32, %v1360_v39  ;;  %v444_v42 = vmul.f32 3.8918573e-05, %v1386_v21 }
  0xb4   : > { %1064 = vrcp.f32 %v373_v22  ;;  %v490_v34 = vmul.f32 %v489_v25, %v1360_v39  ;;  %v434_v46 = vadd.f32 0.00028619796, %v433_v35  ;;  %v362_v51 = vadd.f32 1.1283791, %v361_v37  ;;  %v568_v25 = vpop.permute.xlu1 %567 }
  0xb5   : > { %v411_v33 = vadd.f32 0.4994258, %v410_v29  ;;  %v400_v48 = vadd.f32 0.18741608, %v399_v36  ;;  %v445_v49 = vadd.f32 0.001143296, %v444_v42  ;;  %vm379_vm1 = vweird.f32 %v373_v22 }
  0xb6   : > { %v491_v3 = vadd.f32 0.4994258, %v490_v34  ;;  %v383_v52 = vand.u32 2147483647, %v373_v22  ;;  %v480_v53 = vadd.f32 0.18741608, %v479_v41  ;;  %v435_v57 = vmul.f32 %v434_v46, %v1386_v21  ;;  %v616_v34 = vpop.permute.xlu0 %615 }
  0xb7   : > { %v412_v40 = vmul.f32 %v411_v33, %v1358_v38  ;;  %v446_v58 = vmul.f32 %v445_v49, %v1386_v21  ;;  %v385_v59 = vand.u32 2147483648, %v373_v22  ;;  %v401_v14 = vmul.f32 %v400_v48, %v1358_v38 }
  0xb8   : > { %v492_v45 = vmul.f32 %v491_v3, %v1360_v39  ;;  %v363_v63 = vmul.f32 %v362_v51, %v1334_v20  ;;  %vm384_vm3 = vcmp.eq.f32.partialorder %v383_v52, 8.507059e+37  ;;  %v481_v7 = vmul.f32 %v480_v53, %v1360_v39 }
  0xb9   : > { %v1397_v44 = vadd.f32 1.0, %v412_v40  ;;  %v447_v1 = vadd.f32 0.014752088, %v446_v58  ;;  %v436_v8 = vadd.f32 0.0036580483, %v435_v57  ;;  %v386_v38 = vor.u32 1.1754944e-38, %v385_v59 }
  0xba   : > { %v1065_v47 = vpop.eup %1064  ;;  %v1402_v56 = vadd.f32 1.0, %v492_v45  ;;  %v402_v9 = vadd.f32 1.1283791, %v401_v14  ;;  %vm525_vm5 = vcmp.ge.s32.totalorder %v524_v2, 0  ;;  %vm526_vm6 = vcmp.lt.s32.totalorder %v524_v2, 16  ;;  %v576_v45 = vpop.permute.xlu2 %575 }
  0xbb   : > { %v375_v23 = vmul.f32 %v1065_v47, %v373_v22  ;;  %1066 = vrcp.f32 %v1397_v44  ;;  %vm380_vm2 = vweird.f32 %v1065_v47  ;;  %v423_v19 = vand.u32 2147483647, %v1397_v44  ;;  %vm1427_vm10 = vmand %vm525_vm5, %vm526_vm6 }
  0xbc   : > { %1068 = vrcp.f32 %v1402_v56  ;;  %vm381_vm4 = vmor %vm379_vm1, %vm380_vm2  ;;  %v425_v20 = vand.u32 2147483648, %v1397_v44  ;;  %v448_v13 = vmul.f32 %v447_v1, %v1386_v21  ;;  %v482_v22 = vadd.f32 1.1283791, %v481_v7 }
  0xbd   : > { %v376_v55 = vsub.f32 1.0, %v375_v23  ;;  %v437_v15 = vmul.f32 %v436_v8, %v1386_v21  ;;  %v403_v28 = vmul.f32 %v402_v9, %v1347_v30  ;;  %vm419_vm8 = vweird.f32 %v1397_v44 }
  0xbe   : > { %v449_v24 = vadd.f32 0.112945676, %v448_v13  ;;  %vm1420_vm9 = vcmp.eq.f32.partialorder %v423_v19, 8.507059e+37  ;;  %v426_v37 = vor.u32 1.1754944e-38, %v425_v20  ;;  %v503_v3 = vand.u32 2147483647, %v1402_v56 }
  0xbf   : > { %v377_v60 = vmul.f32 %v1065_v47, %v376_v55  ;;  %v505_v42 = vand.u32 2147483648, %v1402_v56  ;;  %v438_v43 = vadd.f32 0.05243302, %v437_v15  ;;  %v1165_v48 = vmov 0.0  }
  0xc0   : > { %v450_v35 = vmul.f32 %v449_v24, %v1386_v21  ;;  %v1437_v49 = vsel %vm1427_vm10, 1.0, %v1165_v48  ;;  %vm499_vm13 = vweird.f32 %v1402_v56  ;;  %v483_v14 = vmul.f32 %v482_v22, %v1350_v31 }
  0xc1   : > { %v1067_v4 = vpop.eup %1066  ;;  %v378_v5 = vadd.f32 %v1065_v47, %v377_v60  ;;  %v506_v6 = vor.u32 1.1754944e-38, %v505_v42  ;;  %v439_v55 = vmul.f32 %v438_v43, %v1386_v21  ;;  %vm504_vm15 = vcmp.eq.f32.partialorder %v503_v3, 8.507059e+37 }
  0xc2   : > { %v415_v10 = vmul.f32 %v1067_v4, %v1397_v44  ;;  %v1069_v39 = vpop.eup %1068  ;;  %vm420_vm7 = vweird.f32 %v1067_v4  ;;  %v451_v44 = vadd.f32 0.4994258, %v450_v35  ;;  %v344_v1 = vmul.f32 0.5, %v1340_v26 }
  0xc3   : > { %v382_v11 = vsel %vm381_vm4, %v1065_v47, %v378_v5  ;;  %v495_v32 = vmul.f32 %v1069_v39, %v1402_v56  ;;  %vm421_vm11 = vmor %vm419_vm8, %vm420_vm7  ;;  %vm500_vm12 = vweird.f32 %v1069_v39  ;;  %v440_v5 = vadd.f32 0.18741608, %v439_v55 }
  0xc4   : > { %v387_v16 = vsel %vm384_vm3, %v386_v38, %v382_v11  ;;  %v416_v17 = vsub.f32 1.0, %v415_v10  ;;  %v452_v52 = vmul.f32 %v451_v44, %v1386_v21  ;;  %vm501_vm14 = vmor %vm499_vm13, %vm500_vm12  ;;  %v572_v38 = vpop.permute.xlu2 %571  ;;  %v346_v9 = vmul.f32 0.5, %v1342_v27 }
  0xc5   : > { %v388_v18 = vmul.f32 %v387_v16, %v363_v63  ;;  %v496_v40 = vsub.f32 1.0, %v495_v32  ;;  %v564_v63 = vpop.permute.xlu1 %563  ;;  %v441_v19 = vmul.f32 %v440_v5, %v1386_v21 }
  0xc6   : > { %v417_v29 = vmul.f32 %v1067_v4, %v416_v17  ;;  %v453_v57 = vadd.f32 1.0, %v452_v52 }
  0xc7   : > { %v975_v33 = vclamps-f32 %v388_v18, 1.0  ;;  %v497_v47 = vmul.f32 %v1069_v39, %v496_v40 }
  0xc8   : > { %v418_v30 = vadd.f32 %v1067_v4, %v417_v29  ;;  %1070 = vrcp.f32 %v453_v57  ;;  %v465_v18 = vand.u32 2147483648, %v453_v57  ;;  %v463_v15 = vand.u32 2147483647, %v453_v57 }
  0xc9   : > { %v511_v41 = vadd.f32 1.0, %v975_v33  ;;  %v498_v54 = vadd.f32 %v1069_v39, %v497_v47  ;;  %vm459_vm1 = vweird.f32 %v453_v57 }
  0xca   : > { %v422_v46 = vsel %vm421_vm11, %v1067_v4, %v418_v30  ;;  %v466_v21 = vor.u32 1.1754944e-38, %v465_v18  ;;  %vm464_vm3 = vcmp.eq.f32.partialorder %v463_v15, 8.507059e+37  ;;  %v345_v30 = vmul.f32 0.5, %v1368_v50  ;;  %v839_v50 = vld [vmem:[%s1622_s5] sm:$0xff] }
  0xcb   : > { %v515_v51 = vmul.f32 %v511_v41, %v343_v61  ;;  %v427_v23 = vsel %vm1420_vm9, %v426_v37, %v422_v46  ;;  %v502_v60 = vsel %vm501_vm14, %v1069_v39, %v498_v54  ;;  %v442_v39 = vadd.f32 1.1283791, %v441_v19 }
  0xcc   : > { %v428_v53 = vmul.f32 %v427_v23, %v403_v28  ;;  %v507_v61 = vsel %vm504_vm15, %v506_v6, %v502_v60  ;;  %v612_v28 = vpop.permute.xlu2 %611 }
  0xcd   : > { %v1445_v58 = vmul.f32 %v1437_v49, %v515_v51  ;;  %v508_v56 = vmul.f32 %v507_v61, %v483_v14  ;;  %v443_v29 = vmul.f32 %v442_v39, %v1376_v62  ;;  %v604_v62 = vpop.permute.xlu0 %603  ;;  %v556_v46 = vpop.permute.xlu1 %555 }
  0xce   : > { %v976_v59 = vclamps-f32 %v428_v53, 1.0  ;;  %v1071_v11 = vpop.eup %1070 }
  0xcf   : > { %v578_v4 = vmul.f32 %v564_v63, %v1445_v58  ;;  %v978_v8 = vclamps-f32 %v508_v56, 1.0  ;;  %v455_v20 = vmul.f32 %v1071_v11, %v453_v57  ;;  %vm460_vm0 = vweird.f32 %v1071_v11 }
  0xd0   : > { %v512_v2 = vadd.f32 1.0, %v976_v59  ;;  %vm461_vm2 = vmor %vm459_vm1, %vm460_vm0 }
  0xd1   : > { %586 = vrot.lane.b32.xlu2 %v578_v4, %s1164_s12  ;;  %v514_v31 = vadd.f32 1.0, %v978_v8  ;;  %v456_v13 = vsub.f32 1.0, %v455_v20 }
  0xd2   : > { %v516_v7 = vmul.f32 %v512_v2, %v344_v1 }
  0xd3   : > { %v518_v26 = vmul.f32 %v514_v31, %v346_v9  ;;  %v457_v22 = vmul.f32 %v1071_v11, %v456_v13 }
  0xd4   : > { %v1453_v10 = vmul.f32 %v1437_v49, %v516_v7  ;;  %v608_v3 = vpop.permute.xlu2 %607 }
  0xd5   : > { %v533_v17 = vmul.f32 %v1437_v49, %v518_v26  ;;  %v458_v24 = vadd.f32 %v1071_v11, %v457_v22  ;;  %v546_v47 = vpop.permute.xlu1 %545 }
  0xd6   : > { %v579_v16 = vmul.f32 %v568_v25, %v1453_v10  ;;  %v619_v43 = vmul.f32 %v608_v3, %v1453_v10 }
  0xd7   : > { %v581_v27 = vmul.f32 %v576_v45, %v533_v17  ;;  %v462_v25 = vsel %vm461_vm2, %v1071_v11, %v458_v24  ;;  %v621_v36 = vmul.f32 %v616_v34, %v533_v17  ;;  %v618_v45 = vmul.f32 %v604_v62, %v1445_v58 }
  0xd8   : > { %v467_v32 = vsel %vm464_vm3, %v466_v21, %v462_v25 }
  0xd9   : > { %588 = vrot.lane.b32.xlu2 %v579_v16, %s1164_s12  ;;  %592 = vrot.lane.b32.xlu0 %v581_v27, %s1164_s12  ;;  %v468_v33 = vmul.f32 %v467_v32, %v443_v29  ;;  %v559_v32 = vmul.f32 %v546_v47, %v1453_v10 }
  0xdb   : > { %v977_v35 = vclamps-f32 %v468_v33, 1.0 }
  0xdc   : > { %v551_v48 = vpop.permute.xlu2 %550 }
  0xdd   : > { %v513_v37 = vadd.f32 1.0, %v977_v35 }
  0xdf   : > { %v517_v40 = vmul.f32 %v513_v37, %v345_v30 }
  0xe1   : > { %632 = vrot.lane.b32.xlu0 %v621_v36, %s1166_s13  ;;  %v532_v41 = vmul.f32 %v1437_v49, %v517_v40  ;;  %v541_v49 = vpop.permute.xlu1 %540 }
  0xe2   : > { %v558_v6 = vmul.f32 %v541_v49, %v1445_v58 }
  0xe3   : > { %v580_v42 = vmul.f32 %v572_v38, %v532_v41  ;;  %v620_v44 = vmul.f32 %v612_v28, %v532_v41  ;;  %v560_v16 = vmul.f32 %v551_v48, %v532_v41 }
  0xe5   : > { %590 = vrot.lane.b32.xlu2 %v580_v42, %s1164_s12  ;;  %s892_s12 = sshll.u32 %s888_s30, 4  ;;  %s893_s12 = int_to_ptr.hbm [resolvable:$true] %s892_s12 }
  0xe6   : > { %s1094_s14 = sshra.s32 %s893_s12, 4  ;;  %s1095_s14 = int_to_ptr.hbm [resolvable:$true] %s1094_s14 }
  0xe7   : > { %s1096_s24 = scalar_lea.hbm %s1095_s14, 8  ;;  %p1101_p1 = scmp.lt.s32.totalorder %s1095_s14, %s1623_s6 }
  0xe8   : > { %p1097_p12 = scmp.ne.s32.totalorder %s1095_s14, %s1096_s24  ;;  %p1102_p2 = scmp.lt.s32.totalorder %s1100_s17, %s1096_s24 }
  0xe9   : > { %628 = vrot.lane.b32.xlu0 %v619_v43, %s1166_s13 }
  0xea   : > { %p1098_p13 = pnand %p1097_p12, %p1242_p4  ;;  %p1103_p3 = por %p1102_p2, %p1101_p1 }
  0xec   : > { %p1099_p0 = pneg %p1098_p13 }
  0xed   : > { %626 = vrot.lane.b32.xlu2 %v618_v45, %s1166_s13 }
  0xee   : > { %p1104_p5 = pnand %p1103_p3, %p1099_p0 }
  0xf1   : > { %630 = vrot.lane.b32.xlu0 %v620_v44, %s1166_s13  ;;  %s877_s13 = scalar_lea.sflag [#allocation3], %s262_s18 }
  0xf5   : > { %842 = vperm.xlu2 %1060, %v839_v50  }
  0xf9   : > { %647 = vperm.xlu0 %1062, %v1305_v12   ;;  %v561_v12 = vmul.f32 %v556_v46, %v533_v17 }
 0x101   : > { %1063 = vset.pattern.permute.xlu0 %v1160_v0 }
 0x10c   : > { %v656_v23 = vpop.permute.xlu1 %655 }
 0x114   : > { %v652_v53 = vpop.permute.xlu1 %651 }
 0x11c   : > { %v644_v57 = vpop.permute.xlu1 %643 }
 0x12b   : > { %v587_v51 = vpop.permute.xlu2 %586 }
 0x12c   : > { %v598_v55 = vadd.f32 %v587_v51, %v558_v6 }
 0x133   : > { %v589_v52 = vpop.permute.xlu2 %588 }
 0x134   : > { %v599_v35 = vadd.f32 %v589_v52, %v559_v32 }
 0x13f   : > { %v591_v54 = vpop.permute.xlu2 %590 }
 0x140   : > { %v600_v22 = vadd.f32 %v591_v54, %v560_v16 }
 0x147   : > { %v627_v59 = vpop.permute.xlu2 %626 }
 0x148   : > { %v638_v60 = vadd.f32 %v627_v59, %v598_v55 }
 0x14a   : > { %v1472_v61 = vadd.f32 %v644_v57, %v638_v60 }
 0x14b   : > { %v593_v14 = vpop.permute.xlu0 %592 }
 0x14c   : > { %v1475_v0 = vmul.f32 0.70710677, %v1472_v61  ;;  %v601_v1 = vadd.f32 %v593_v14, %v561_v12 }
 0x14e   : > { %v670_v63 = vmul.f32 %v1475_v0, %v1475_v0 }
 0x150   : > { %v1479_v56 = vmin.f32 %v670_v63, 16.0 }
 0x152   : > { %v683_v5 = vmul.f32 3.8918573e-05, %v1479_v56  ;;  %v672_v36 = vmul.f32 2.1237322e-06, %v1479_v56 }
 0x153   : > { %v633_v2 = vpop.permute.xlu0 %632 }
 0x154   : > { %v641_v4 = vadd.f32 %v633_v2, %v601_v1  ;;  %v684_v8 = vadd.f32 0.001143296, %v683_v5  ;;  %v673_v62 = vadd.f32 0.00028619796, %v672_v36 }
 0x156   : > { %v1481_v58 = vadd.f32 %v656_v23, %v641_v4  ;;  %v685_v31 = vmul.f32 %v684_v8, %v1479_v56  ;;  %v674_v52 = vmul.f32 %v673_v62, %v1479_v56 }
 0x158   : > { %v1485_v7 = vmul.f32 0.70710677, %v1481_v58  ;;  %v686_v19 = vadd.f32 0.014752088, %v685_v31  ;;  %v675_v12 = vadd.f32 0.0036580483, %v674_v52 }
 0x15a   : > { %v790_v38 = vmul.f32 %v1485_v7, %v1485_v7  ;;  %v687_v13 = vmul.f32 %v686_v19, %v1479_v56  ;;  %v676_v31 = vmul.f32 %v675_v12, %v1479_v56 }
 0x15b   : > { %v629_v9 = vpop.permute.xlu0 %628 }
 0x15c   : > { %v1490_v11 = vmin.f32 %v790_v38, 16.0  ;;  %v688_v18 = vadd.f32 0.112945676, %v687_v13  ;;  %v639_v41 = vadd.f32 %v629_v9, %v599_v35 }
 0x15e   : > { %v792_v26 = vmul.f32 2.1237322e-06, %v1490_v11  ;;  %v803_v20 = vmul.f32 3.8918573e-05, %v1490_v11  ;;  %v689_v25 = vmul.f32 %v688_v18, %v1479_v56 }
 0x160   : > { %v793_v17 = vadd.f32 0.00028619796, %v792_v26  ;;  %v804_v39 = vadd.f32 0.001143296, %v803_v20  ;;  %v690_v3 = vadd.f32 0.4994258, %v689_v25 }
 0x162   : > { %v794_v15 = vmul.f32 %v793_v17, %v1490_v11  ;;  %v805_v27 = vmul.f32 %v804_v39, %v1490_v11  ;;  %v691_v47 = vmul.f32 %v690_v3, %v1479_v56 }
 0x163   : > { %v631_v24 = vpop.permute.xlu0 %630 }
 0x164   : > { %v640_v21 = vadd.f32 %v631_v24, %v600_v22  ;;  %v806_v28 = vadd.f32 0.014752088, %v805_v27  ;;  %v795_v29 = vadd.f32 0.0036580483, %v794_v15  ;;  %v1525_v59 = vadd.f32 1.0, %v691_v47 }
 0x165   : > { %v677_v27 = vadd.f32 0.05243302, %v676_v31 }
 0x166   : > { %v1499_v33 = vadd.f32 %v652_v53, %v640_v21  ;;  %v807_v34 = vmul.f32 %v806_v28, %v1490_v11  ;;  %v796_v37 = vmul.f32 %v795_v29, %v1490_v11  ;;  %vm698_vm9 = vweird.f32 %v1525_v59 }
 0x168   : > { %v1504_v30 = vmul.f32 0.70710677, %v1499_v33  ;;  %v808_v40 = vadd.f32 0.112945676, %v807_v34  ;;  %v797_v50 = vadd.f32 0.05243302, %v796_v37 }
 0x16a   : > { %v750_v42 = vmul.f32 %v1504_v30, %v1504_v30  ;;  %v809_v10 = vmul.f32 %v808_v40, %v1490_v11  ;;  %v798_v6 = vmul.f32 %v797_v50, %v1490_v11 }
 0x16b   : > { %v648_v43 = vpop.permute.xlu0 %647 }
 0x16c   : > { %v1510_v44 = vmin.f32 %v750_v42, 16.0  ;;  %v1512_v45 = vadd.f32 %v648_v43, %v639_v41  ;;  %v810_v46 = vadd.f32 0.4994258, %v809_v10  ;;  %v799_v4 = vadd.f32 0.18741608, %v798_v6 }
 0x16d   : > { %v678_v42 = vmul.f32 %v677_v27, %v1479_v56 }
 0x16e   : > { %v1516_v48 = vmul.f32 0.70710677, %v1512_v45  ;;  %v752_v49 = vmul.f32 2.1237322e-06, %v1510_v44  ;;  %v811_v51 = vmul.f32 %v810_v46, %v1490_v11  ;;  %v763_v23 = vmul.f32 3.8918573e-05, %v1510_v44 }
 0x16f   : > { %v800_v16 = vmul.f32 %v799_v4, %v1490_v11  ;;  %v679_v6 = vadd.f32 0.18741608, %v678_v42 }
 0x170   : > { %v710_v53 = vmul.f32 %v1516_v48, %v1516_v48  ;;  %v753_v54 = vadd.f32 0.00028619796, %v752_v49  ;;  %v812_v55 = vadd.f32 1.0, %v811_v51  ;;  %v764_v57 = vadd.f32 0.001143296, %v763_v23 }
 0x171   : > { %v801_v28 = vadd.f32 1.1283791, %v800_v16  ;;  %v680_v4 = vmul.f32 %v679_v6, %v1479_v56 }
 0x172   : > { %v1527_v14 = vmin.f32 %v710_v53, 16.0  ;;  %1072 = vrcp.f32 %v812_v55  ;;  %v754_v60 = vmul.f32 %v753_v54, %v1510_v44  ;;  %v765_v1 = vmul.f32 %v764_v57, %v1510_v44 }
 0x173   : > { %1074 = vrcp.f32 %v1525_v59  ;;  %v824_v29 = vand.u32 2147483648, %v812_v55  ;;  %v822_v35 = vand.u32 2147483647, %v812_v55  ;;  %vm818_vm5 = vweird.f32 %v812_v55 }
 0x174   : > { %v712_v63 = vmul.f32 2.1237322e-06, %v1527_v14  ;;  %v723_v2 = vmul.f32 3.8918573e-05, %v1527_v14  ;;  %v766_v8 = vadd.f32 0.014752088, %v765_v1  ;;  %v802_v50 = vmul.f32 %v801_v28, %v1485_v7 }
 0x175   : > { %v755_v9 = vadd.f32 0.0036580483, %v754_v60  ;;  %v825_v43 = vor.u32 1.1754944e-38, %v824_v29  ;;  %vm823_vm7 = vcmp.eq.f32.partialorder %v822_v35, 8.507059e+37 }
 0x176   : > { %v713_v5 = vadd.f32 0.00028619796, %v712_v63  ;;  %v724_v38 = vadd.f32 0.001143296, %v723_v2  ;;  %v767_v26 = vmul.f32 %v766_v8, %v1510_v44  ;;  %v665_v63 = vmul.f32 0.5, %v1481_v58 }
 0x177   : > { %v756_v18 = vmul.f32 %v755_v9, %v1510_v44  ;;  %v704_v58 = vand.u32 2147483648, %v1525_v59 }
 0x178   : > { %v714_v19 = vmul.f32 %v713_v5, %v1527_v14  ;;  %v725_v20 = vmul.f32 %v724_v38, %v1527_v14  ;;  %v1073_v13 = vpop.eup %1072  ;;  %v768_v22 = vadd.f32 0.112945676, %v767_v26  ;;  %v681_v26 = vadd.f32 1.1283791, %v680_v4 }
 0x179   : > { %v814_v17 = vmul.f32 %v1073_v13, %v812_v55  ;;  %v1539_v39 = vpop.eup %1074  ;;  %vm819_vm4 = vweird.f32 %v1073_v13  ;;  %v757_v36 = vadd.f32 0.05243302, %v756_v18 }
 0x17a   : > { %v726_v15 = vadd.f32 0.014752088, %v725_v20  ;;  %v715_v24 = vadd.f32 0.0036580483, %v714_v19  ;;  %v769_v25 = vmul.f32 %v768_v22, %v1510_v44  ;;  %v694_v11 = vmul.f32 %v1539_v39, %v1525_v59  ;;  %vm820_vm6 = vmor %vm818_vm5, %vm819_vm4 }
 0x17b   : > { %v815_v21 = vsub.f32 1.0, %v814_v17  ;;  %v758_v51 = vmul.f32 %v757_v36, %v1510_v44  ;;  %vm699_vm8 = vweird.f32 %v1539_v39  ;;  %v682_v28 = vmul.f32 %v681_v26, %v1475_v0 }
 0x17c   : > { %v727_v32 = vmul.f32 %v726_v15, %v1527_v14  ;;  %v770_v37 = vadd.f32 0.4994258, %v769_v25  ;;  %v716_v3 = vmul.f32 %v715_v24, %v1527_v14  ;;  %v695_v47 = vsub.f32 1.0, %v694_v11  ;;  %vm1562_vm10 = vmor %vm698_vm9, %vm699_vm8 }
 0x17d   : > { %v816_v34 = vmul.f32 %v1073_v13, %v815_v21  ;;  %v759_v60 = vadd.f32 0.18741608, %v758_v51  ;;  %v705_v21 = vor.u32 1.1754944e-38, %v704_v58  ;;  %vm845_vm4 = vcmask 261120  }
 0x17e   : > { %v728_v40 = vadd.f32 0.112945676, %v727_v32  ;;  %v771_v10 = vmul.f32 %v770_v37, %v1510_v44  ;;  %v717_v53 = vadd.f32 0.05243302, %v716_v3  ;;  %v696_v12 = vmul.f32 %v1539_v39, %v695_v47 }
 0x17f   : > { %v817_v41 = vadd.f32 %v1073_v13, %v816_v34  ;;  %v760_v38 = vmul.f32 %v759_v60, %v1510_v44  ;;  %vm874_vm5 = vcmask 130048  }
 0x180   : > { %v729_v62 = vmul.f32 %v728_v40, %v1527_v14  ;;  %v772_v23 = vadd.f32 1.0, %v771_v10  ;;  %v718_v7 = vmul.f32 %v717_v53, %v1527_v14  ;;  %v697_v9 = vadd.f32 %v1539_v39, %v696_v12 }
 0x181   : > { %v821_v46 = vsel %vm820_vm6, %v1073_v13, %v817_v41  ;;  %v702_v13 = vand.u32 2147483647, %v1525_v59  ;;  %v761_v44 = vadd.f32 1.1283791, %v760_v38  ;;  %v664_v10 = vmul.f32 0.5, %v1499_v33  ;;  %v838_v33 = vld [vmem:[%s1621_s4] sm:$0xff] }
 0x182   : > { %v826_v49 = vsel %vm823_vm7, %v825_v43, %v821_v46  ;;  %v730_v52 = vadd.f32 0.4994258, %v729_v62  ;;  %1076 = vrcp.f32 %v772_v23  ;;  %v719_v31 = vadd.f32 0.18741608, %v718_v7 }
 0x183   : > { %v827_v54 = vmul.f32 %v826_v49, %v802_v50  ;;  %v784_v16 = vand.u32 2147483648, %v772_v23  ;;  %v701_v17 = vsel %vm1562_vm10, %v1539_v39, %v697_v9  ;;  %v782_v27 = vand.u32 2147483647, %v772_v23 }
 0x184   : > { %v731_v57 = vmul.f32 %v730_v52, %v1527_v14  ;;  %v720_v22 = vmul.f32 %v719_v31, %v1527_v14  ;;  %vm778_vm12 = vweird.f32 %v772_v23  ;;  %vm703_vm13 = vcmp.eq.f32.partialorder %v702_v13, 8.507059e+37 }
 0x185   : > { %v983_v55 = vclamps-f32 %v827_v54, 1.0  ;;  %v762_v59 = vmul.f32 %v761_v44, %v1504_v30  ;;  %v785_v25 = vor.u32 1.1754944e-38, %v784_v16  ;;  %v706_v34 = vsel %vm703_vm13, %v705_v21, %v701_v17 }
 0x186   : > { %v732_v2 = vadd.f32 1.0, %v731_v57  ;;  %v721_v39 = vadd.f32 1.1283791, %v720_v22  ;;  %vm783_vm15 = vcmp.eq.f32.partialorder %v782_v27, 8.507059e+37  ;;  %v707_v0 = vmul.f32 %v706_v34, %v682_v28 }
 0x187   : > { %v833_v1 = vadd.f32 1.0, %v983_v55  ;;  %v662_v54 = vmul.f32 0.5, %v1472_v61  ;;  %v871_v61 = vpop.permute.xlu1 %870 }
 0x188   : > { %1078 = vrcp.f32 %v732_v2  ;;  %v1077_v8 = vpop.eup %1076  ;;  %v744_v14 = vand.u32 2147483648, %v732_v2  ;;  %v742_v37 = vand.u32 2147483647, %v732_v2  ;;  %vm738_vm1 = vweird.f32 %v732_v2 }
 0x189   : > { %v837_v5 = vmul.f32 %v833_v1, %v665_v63  ;;  %v774_v19 = vmul.f32 %v1077_v8, %v772_v23  ;;  %vm779_vm11 = vweird.f32 %v1077_v8  ;;  %v722_v30 = vmul.f32 %v721_v39, %v1516_v48 }
 0x18a   : > { %vm780_vm14 = vmor %vm778_vm12, %vm779_vm11  ;;  %v745_v42 = vor.u32 1.1754944e-38, %v744_v14  ;;  %vm743_vm3 = vcmp.eq.f32.partialorder %v742_v37, 8.507059e+37  ;;  %v980_v47 = vclamps-f32 %v707_v0, 1.0  ;;  %v663_v23 = vmul.f32 0.5, %v1512_v45  ;;  %v843_v45 = vpop.permute.xlu2 %842 }
 0x18b   : > { %861 = vmatpush.msra.mxu1 %v837_v5  ;;  %v775_v20 = vsub.f32 1.0, %v774_v19 }
 0x18c   : > { %v830_v53 = vadd.f32 1.0, %v980_v47 }
 0x18d   : > { %v776_v15 = vmul.f32 %v1077_v8, %v775_v20 }
 0x18e   : > { %v1079_v18 = vpop.eup %1078  ;;  %v834_v6 = vmul.f32 %v830_v53, %v662_v54 }
 0x18f   : > { %v734_v24 = vmul.f32 %v1079_v18, %v732_v2  ;;  %v777_v29 = vadd.f32 %v1077_v8, %v776_v15  ;;  %vm739_vm0 = vweird.f32 %v1079_v18 }
 0x190   : > { %vm740_vm2 = vmor %vm738_vm1, %vm739_vm0 }
 0x191   : > { %v735_v32 = vsub.f32 1.0, %v734_v24  ;;  %v781_v35 = vsel %vm780_vm14, %v1077_v8, %v777_v29 }
 0x192   : > { %v786_v11 = vsel %vm783_vm15, %v785_v25, %v781_v35 }
 0x193   : > { %v736_v36 = vmul.f32 %v1079_v18, %v735_v32  ;;  %v787_v40 = vmul.f32 %v786_v11, %v762_v59 }
 0x195   : > { %v737_v3 = vadd.f32 %v1079_v18, %v736_v36  ;;  %v982_v41 = vclamps-f32 %v787_v40, 1.0 }
 0x197   : > { %v741_v43 = vsel %vm740_vm2, %v1079_v18, %v737_v3  ;;  %v832_v62 = vadd.f32 1.0, %v982_v41 }
 0x198   : > { %v746_v50 = vsel %vm743_vm3, %v745_v42, %v741_v43 }
 0x199   : > { %v747_v46 = vmul.f32 %v746_v50, %v722_v30  ;;  %v836_v49 = vmul.f32 %v832_v62, %v664_v10 }
 0x19b   : > { %v981_v51 = vclamps-f32 %v747_v46, 1.0  ;;  %862 = vmatpush.msra.mxu1 %v836_v49 }
 0x19d   : > { %v831_v52 = vadd.f32 1.0, %v981_v51 }
 0x19f   : > { %v835_v48 = vmul.f32 %v831_v52, %v663_v23 }
 0x1a1   : > { %863 = vmatpush.msra.mxu1 %v835_v48 }
 0x1a3   : > { %864 = vmatpush.msra.mxu1 %v834_v6 }
 0x1a4   : > { %984 = vmatmul.msk.f32.vlgmr.msra.gmra.mxu1 %vm845_vm4, %v838_v33 }
 0x221   : > { %v866_v55 = vpop.f32.mrf.mxu1 }
 0x222   : > { %v867_v57 = vadd.f32 %v866_v55, %v843_v45 }
 0x224   : > { %v873_v60 = vadd.f32 %v871_v61, %v867_v57 }
 0x226   : > { %875 = vst.msk [vmem:[%s264_s8] sm:$0xff] %vm874_vm5, %v873_v60 }
 0x227   : > { %1107 = shalt.err (!%p1104_p5)
}
 0x228   : > { %991 = dma.vmem_to_hbm [thread:$0]  (%p1242_p4), %s891_s11, 128, %s893_s12, %s877_s13  }
 0x229 PF: > { %p997_p6 = scmp.ge.s32.totalorder %s1158_s26, 2  ;;  %s904_s18 = sand.u32 1, %s1138_s21  }
 0x22a   : > { %s905_s27 = scalar_lea.sflag [#allocation3], %s904_s18 }
 0x22b   : > { %p994_p7 = pnand %p997_p6, %p1249_p8 }
 0x22d   : > { %p995_p9 = pneg %p994_p7 }
 0x22f   : > { %1133 = dma.done.wait (%p995_p9), %s905_s27, 128  }
 0x230   : > { %1135 = vsyncadd (%p995_p9), %s905_s27, 4294967168  ;;  %s19_s26 = sadd.s32 1, %s1158_s26   ;;  %s1632_s21 = smov %s1142_s22 }
 0x231   : > { %p16_p10 = scmp.ge.s32.totalorder %s19_s26, 4   ;;  %s1633_s22 = smov %s1146_s23 }
 0x232   : > { %s1634_s23 = smov %s1255_s10  ;;  %s1635_s24 = smov %s1154_s25 }
 0x233   : > { %s1636_s25 = smov %s1638_s29  ;;  %18 = sbr.rel (!%p16_p10) target bundleno = 4 (0x4), region = 79 }
 0x238   :  { %911 = vsyncpa [#allocation3], 1 }
 0x239   :  { %913 = vsyncpa [#allocation3 + $0x1], 1 }

</bundles_post_ra>
